<compile_context>
chip_gen: v6e
topology: v6e:2x2x1
jax: 0.10.0
libtpu: 0.0.40
codegen_flags: <defaults>
</compile_context>

<pallas_src>
import math
import numpy as np
import jax
import jax.numpy as jnp
from jax import lax
from jax.experimental import pallas as pl
from jax.experimental.pallas import tpu as pltpu

SHIFT = 0
REDUCE = 1


def _round_up(x, m):
    return ((x + m - 1) // m) * m


def _pad2(rows, cols, itemsize=4):
    """Rough (8,128)-tile-padded VMEM bytes of a 2D f32 slab."""
    return _round_up(max(int(rows), 1), 8) * _round_up(max(int(cols), 1), 128) * itemsize


def _vmem_limit(est_bytes):
    # Floor at the common 32 MiB scoped default, cap safely below v7x's 64 MiB physical.
    return int(min(56 * 2**20, max(32 * 2**20, int(1.5 * est_bytes))))


# ----------------------------------------------------------------------------
# Kernel 1: fused buffer projection
#   proj = x @ [wx | wg] + [bx | bg]           (single MXU push)
#   c    = proj[:, :H] ;  h = sigmoid(proj[:, H:]) * tanh(c)
#   output row = [h | c]  (interleaved, so the tree kernel moves ONE row per SHIFT)
# ----------------------------------------------------------------------------
def _buffers_kernel(x_ref, w_ref, b_ref, out_ref):
    hdim = out_ref.shape[1] // 2
    proj = jnp.dot(x_ref[...], w_ref[...],
                   preferred_element_type=jnp.float32) + b_ref[...]
    c = proj[:, :hdim]
    gate = proj[:, hdim:]
    h = jax.nn.sigmoid(gate) * jnp.tanh(c)
    out_ref[...] = jnp.concatenate([h, c], axis=-1)          # [h | c]


def project_buffers(x2d, w_fused, b_fused):
    n, e = x2d.shape
    h2 = w_fused.shape[1]                                    # 2H

    def tile_bytes(t):
        # in/out tiles double-buffered + (weights, bias) double-buffered
        return 2 * (_pad2(t, e) + _pad2(t, h2)) + 2 * (_pad2(e, h2) + _pad2(1, h2))

    tr = 512
    while tr > 8 and tile_bytes(tr) > 6 * 2**20:             # v5e-safe tile budget
        tr //= 2
    tr = max(8, min(tr, _round_up(n, 8)))
    n_pad = _round_up(n, tr)
    if n_pad != n:
        x2d = jnp.pad(x2d, ((0, n_pad - n), (0, 0)))

    out = pl.pallas_call(
        _buffers_kernel,
        out_shape=jax.ShapeDtypeStruct((n_pad, h2), jnp.float32),
        grid=(n_pad // tr,),
        in_specs=[pl.BlockSpec((tr, e), lambda i: (i, 0)),
                  pl.BlockSpec((e, h2), lambda i: (0, 0)),
                  pl.BlockSpec((1, h2), lambda i: (0, 0))],
        out_specs=pl.BlockSpec((tr, h2), lambda i: (i, 0)),
        compiler_params=pltpu.CompilerParams(
            dimension_semantics=("parallel",),
            vmem_limit_bytes=_vmem_limit(tile_bytes(tr))),
    )(x2d, w_fused, b_fused)
    return out[:n]


# ----------------------------------------------------------------------------
# Kernel 2: the whole shift-reduce tree encoder.
#   grid = (batch_chunks,), marked "parallel"  -> v7x shards chunks across its 2 TCs.
#   Each grid step owns Bc = B // batch_chunks sentences and runs the full
#   2T-1 transition loop with lax.fori_loop (no per-step grid overhead).
#   transitions: flat 1-D int32 in SMEM via scalar prefetch, indexed s*B + b_global.
#   Per-chunk stacks (rows = [h | c]) live in VMEM scratch; pointers in SMEM scratch.
# ----------------------------------------------------------------------------
def _make_tree_kernel(B, Bc, T, H, n_steps):
    def kernel(trans_ref,                  # SMEM [n_steps * B] int32 (scalar prefetch)
               buf_ref,                    # VMEM [Bc, T, 2H]   this chunk's buffers [h|c]
               w_ref, b_ref,               # VMEM [2H, 5H], [1, 5H]
               out_ref,                    # VMEM [1, Bc, H]
               stack_ref,                  # VMEM scratch [Bc*T, 2H]  per-chunk stacks [h|c]
               l_ref, r_ref,               # VMEM scratch [Bc, 2H]    left / right child
               sp_ref, bp_ref):            # SMEM scratch (Bc,) int32 stack / buffer ptrs
        g = pl.program_id(0)

        # ---- per-chunk init (the entire transition loop runs in this invocation) ----
        l_ref[...] = jnp.zeros_like(l_ref)
        r_ref[...] = jnp.zeros_like(r_ref)
        for b in range(Bc):
            sp_ref[b] = 0
            bp_ref[b] = T - 1              # buffer.pop() pops from the end

        def step(s, carry):
            base = s * B + g * Bc
            trs, sps = [], []
            any_red = jnp.zeros((), jnp.bool_)

            # -- phase 1: SHIFT pushes / REDUCE child gathers (unrolled over chunk) --
            for b in range(Bc):
                tr = trans_ref[base + b]
                sp = sp_ref[b]
                bp = bp_ref[b]
                trs.append(tr)
                sps.append(sp)

                @pl.when(tr == SHIFT)
                def _shift():
                    stack_ref[pl.ds(b * T + sp, 1), :] = buf_ref[b, pl.ds(bp, 1), :]
                    sp_ref[b] = sp + 1
                    bp_ref[b] = bp - 1

                @pl.when(tr == REDUCE)
                def _gather():
                    l_ref[pl.ds(b, 1), :] = stack_ref[pl.ds(b * T + sp - 2, 1), :]
                    r_ref[pl.ds(b, 1), :] = stack_ref[pl.ds(b * T + sp - 1, 1), :]

                any_red = jnp.logical_or(any_red, tr == REDUCE)

            # -- phases 2+3: skipped entirely on shift-only steps ---------------------
            @pl.when(any_red)
            def _reduce_step():
                lc = l_ref[...]
                rc = r_ref[...]
                h_l, c_l = lc[:, :H], lc[:, H:]
                h_r, c_r = rc[:, :H], rc[:, H:]
                # single MXU pass against the full [2H, 5H] reduce weight
                proj = jnp.dot(jnp.concatenate([h_l, h_r], axis=-1), w_ref[...],
                               preferred_element_type=jnp.float32) + b_ref[...]
                i_g = proj[:, 0 * H:1 * H]
                f_l = proj[:, 1 * H:2 * H]
                f_r = proj[:, 2 * H:3 * H]
                g_g = proj[:, 3 * H:4 * H]
                o_g = proj[:, 4 * H:5 * H]
                c_new = (jax.nn.sigmoid(i_g) * jnp.tanh(g_g)
                         + jax.nn.sigmoid(f_l) * c_l
                         + jax.nn.sigmoid(f_r) * c_r)
                h_new = jax.nn.sigmoid(o_g) * jnp.tanh(c_new)
                hc_new = jnp.concatenate([h_new, c_new], axis=-1)        # [Bc, 2H]

                # scatter only to rows that actually reduced (pop 2, push 1)
                for b in range(Bc):
                    @pl.when(trs[b] == REDUCE)
                    def _scatter():
                        sp = sps[b]
                        stack_ref[pl.ds(b * T + sp - 2, 1), :] = hc_new[b:b + 1, :]
                        sp_ref[b] = sp - 1

            return carry

        lax.fori_loop(0, n_steps, step, 0)

        # ---- emit root h state for every sentence in this chunk --------------------
        for b in range(Bc):
            sp = sp_ref[b]
            root = stack_ref[pl.ds(b * T + sp - 1, 1), :]
            out_ref[0, b:b + 1, :] = root[:, :H]

    return kernel


def run_tree_kernel(buf, w_red, b_red, transitions, B, T, H, batch_chunks=1):
    assert B % batch_chunks == 0, "batch_chunks must divide B"
    Bc = B // batch_chunks
    trans = jnp.asarray(transitions, jnp.int32).reshape(-1)     # flat 1-D -> tiny SMEM
    n_steps = int(np.asarray(transitions).shape[0])

    est = (2 * Bc * _pad2(T, 2 * H)        # buffer block (double-buffered)
           + 2 * _pad2(2 * H, 5 * H)        # w_red
           + 2 * _pad2(1, 5 * H)            # b_red
           + 2 * _pad2(Bc, H)               # output block
           + _pad2(Bc * T, 2 * H)           # stack scratch
           + 2 * _pad2(Bc, 2 * H))          # child scratch

    out = pl.pallas_call(
        _make_tree_kernel(B, Bc, T, H, n_steps),
        out_shape=jax.ShapeDtypeStruct((batch_chunks, Bc, H), jnp.float32),
        grid_spec=pltpu.PrefetchScalarGridSpec(
            num_scalar_prefetch=1,
            grid=(batch_chunks,),
            in_specs=[pl.BlockSpec((Bc, T, 2 * H), lambda g, tr: (g, 0, 0)),
                      pl.BlockSpec((2 * H, 5 * H), lambda g, tr: (0, 0)),
                      pl.BlockSpec((1, 5 * H), lambda g, tr: (0, 0))],
            out_specs=pl.BlockSpec((1, Bc, H), lambda g, tr: (g, 0, 0)),
            scratch_shapes=[pltpu.VMEM((Bc * T, 2 * H), jnp.float32),   # stacks [h|c]
                            pltpu.VMEM((Bc, 2 * H), jnp.float32),       # left child
                            pltpu.VMEM((Bc, 2 * H), jnp.float32),       # right child
                            pltpu.SMEM((Bc,), jnp.int32),               # stack ptr
                            pltpu.SMEM((Bc,), jnp.int32)]),             # buffer ptr
        compiler_params=pltpu.CompilerParams(
            dimension_semantics=("parallel",),        # chunks are independent sentences
            vmem_limit_bytes=_vmem_limit(est)),
    )(trans, buf, w_red, b_red)
    return out.reshape(B, H)


# ----------------------------------------------------------------------------
# Parameter init (deterministic, mirrors shapes of the PyTorch module)
# ----------------------------------------------------------------------------
def init_params(key, input_size, hidden_size):
    ks = jax.random.split(key, 6)
    stdv_x = 1.0 / math.sqrt(input_size)       # PyTorch default Linear init
    stdv_h = 1.0 / math.sqrt(hidden_size)      # TreeLSTMCell.reset_parameters
    u = lambda k, shape, s: jax.random.uniform(k, shape, jnp.float32, -s, s)
    p = {
        "wx": u(ks[0], (input_size, hidden_size), stdv_x),       # proj_x.weight^T
        "bx": u(ks[1], (1, hidden_size), stdv_x),                # proj_x.bias
        "wg": u(ks[2], (input_size, hidden_size), stdv_x),       # proj_x_gate.weight^T
        "bg": u(ks[3], (1, hidden_size), stdv_x),                # proj_x_gate.bias
        "w_red": u(ks[4], (2 * hidden_size, 5 * hidden_size), stdv_h),
        "b_red": u(ks[5], (1, 5 * hidden_size), stdv_h),
    }
    # fused projection weights precomputed ONCE (no per-forward concat)
    p["w_buf"] = jnp.concatenate([p["wx"], p["wg"]], axis=1)     # [E, 2H]
    p["b_buf"] = jnp.concatenate([p["bx"], p["bg"]], axis=1)     # [1, 2H]
    return p


# ----------------------------------------------------------------------------
# Forward pass (fully on device: 2 pallas_calls total)
# ----------------------------------------------------------------------------
def tree_lstm_forward(params, x, transitions, batch_chunks=1):
    """batch_chunks=1 for single-TensorCore chips (v5e/v6e); use 2 on v7x."""
    B, T, E = x.shape
    H = params["wx"].shape[1]
    buf2d = project_buffers(x.reshape(B * T, E), params["w_buf"], params["b_buf"])
    buf = buf2d.reshape(B, T, 2 * H)                             # rows are [h | c]
    return run_tree_kernel(buf, params["w_red"], params["b_red"],
                           transitions, B, T, H, batch_chunks=batch_chunks)


# ----------------------------------------------------------------------------
# Pure-JAX reference (list-based, mirrors the PyTorch module structure)
# ----------------------------------------------------------------------------
def _batch(states):
    cat = jnp.concatenate(states, axis=0)
    hdim = cat.shape[1] // 2
    return cat[:, :hdim], cat[:, hdim:]


def tree_lstm_forward_ref(params, x, transitions):
    B, T, E = x.shape
    H = params["wx"].shape[1]
    x2 = x.reshape(B * T, E)
    c_buf = x2 @ params["wx"] + params["bx"]
    h_buf = jax.nn.sigmoid(x2 @ params["wg"] + params["bg"]) * jnp.tanh(c_buf)
    buf = jnp.concatenate([h_buf, c_buf], axis=-1).reshape(B, T, 2 * H)

    buffers = [[buf[b, t][None, :] for t in range(T)] for b in range(B)]
    stacks = [[] for _ in range(B)]
    for t_batch in np.asarray(transitions):
        child_l, child_r = [], []
        for transition, buffer, stack in zip(t_batch, buffers, stacks):
            if transition == SHIFT:
                stack.append(buffer.pop())
            elif transition == REDUCE:
                child_r.append(stack.pop())
                child_l.append(stack.pop())
        if child_l:
            h_l, c_l = _batch(child_l)
            h_r, c_r = _batch(child_r)
            proj = jnp.concatenate([h_l, h_r], 1) @ params["w_red"] + params["b_red"]
            i, f_l, f_r, g, o = jnp.split(proj, 5, axis=-1)
            c = (jax.nn.sigmoid(i) * jnp.tanh(g)
                 + jax.nn.sigmoid(f_l) * c_l + jax.nn.sigmoid(f_r) * c_r)
            h = jax.nn.sigmoid(o) * jnp.tanh(c)
            new_states = jnp.concatenate([h, c], 1)
            reduced = iter([new_states[i][None, :] for i in range(new_states.shape[0])])
            for transition, stack in zip(t_batch, stacks):
                if transition == REDUCE:
                    stack.append(next(reduced))
    return jnp.concatenate([stack.pop()[:, :H] for stack in stacks], axis=0)


if __name__ == "__main__":
    B, T, E, H = 2, 8, 16, 32
    key = jax.random.PRNGKey(0)
    k_param, k_x = jax.random.split(key)

    params = init_params(k_param, E, H)
    x = jax.random.normal(k_x, (B, T, E), dtype=jnp.float32)

    # valid shift-reduce transition sequences of length 2T-1 = 15, per batch element
    S, R = SHIFT, REDUCE
    seq0 = [S, S, R, S, R, S, R, S, R, S, R, S, R, S, R]               # left-branching
    seq1 = [S, S, S, S, S, S, S, S, R, R, R, R, R, R, R]               # right-branching
    transitions = np.stack([seq0, seq1], axis=1).astype(np.int32)      # [2T-1, B]

    ref = jax.block_until_ready(tree_lstm_forward_ref(params, x, transitions))

    # single-chunk path (whole batch on one TensorCore: v5e / v6e)
    out1 = jax.block_until_ready(tree_lstm_forward(params, x, transitions, batch_chunks=1))
    np.testing.assert_allclose(np.asarray(out1), np.asarray(ref), rtol=1e-4, atol=1e-4)

    # two-chunk path (parallel batch axis: shards across v7x's 2 TensorCores)
    out2 = jax.block_until_ready(tree_lstm_forward(params, x, transitions, batch_chunks=2))
    np.testing.assert_allclose(np.asarray(out2), np.asarray(ref), rtol=1e-4, atol=1e-4)

    assert out1.shape == (B, H)
    print("KERNEL_OK")
</pallas_src>

<mosaic_0001>
module attributes {stable_mosaic.version = 11 : i64} {
  func.func @_buffers_kernel(%arg0: i32, %arg1: memref<16x16xf32, #tpu.memory_space<vmem>>, %arg2: memref<16x64xf32, #tpu.memory_space<vmem>>, %arg3: memref<1x64xf32, #tpu.memory_space<vmem>>, %arg4: memref<16x64xf32, #tpu.memory_space<vmem>>) attributes {dimension_semantics = [#tpu.dimension_semantics<parallel>], iteration_bounds = array<i64: 1>, scalar_prefetch = 0 : i64, scratch_operands = 0 : i64, tpu.core_type = #tpu.core_type<tc>, window_params = [{transform_indices = @transform_0, window_bounds = array<i64: 16, 16>}, {pipeline_mode = #tpu.pipeline_mode<synchronous>, transform_indices = @transform_1, window_bounds = array<i64: 16, 64>}, {pipeline_mode = #tpu.pipeline_mode<synchronous>, transform_indices = @transform_2, window_bounds = array<i64: 1, 64>}, {transform_indices = @transform_3, window_bounds = array<i64: 16, 64>}]} {
    %c0 = arith.constant 0 : index
    %c0_0 = arith.constant 0 : index
    %0 = vector.load %arg1[%c0, %c0_0] : memref<16x16xf32, #tpu.memory_space<vmem>>, vector<16x16xf32>
    %c0_1 = arith.constant 0 : index
    %c0_2 = arith.constant 0 : index
    %1 = vector.load %arg2[%c0_1, %c0_2] : memref<16x64xf32, #tpu.memory_space<vmem>>, vector<16x64xf32>
    %cst = arith.constant dense<0.000000e+00> : vector<16x64xf32>
    %2 = tpu.matmul %0, %1, %cst {dimension_numbers = #tpu.dot_dimension_numbers<[1], [0], [0], [1], [0, 0, 1, 1], [], []>} : vector<16x16xf32>, vector<16x64xf32>, vector<16x64xf32> -> vector<16x64xf32>
    %c0_3 = arith.constant 0 : index
    %c0_4 = arith.constant 0 : index
    %3 = vector.load %arg3[%c0_3, %c0_4] : memref<1x64xf32, #tpu.memory_space<vmem>>, vector<1x64xf32>
    %4 = vector.broadcast %3 : vector<1x64xf32> to vector<16x64xf32>
    %5 = arith.addf %2, %4 : vector<16x64xf32>
    %6 = vector.extract_strided_slice %5 {offsets = [0, 0], sizes = [16, 32], strides = [1, 1]} : vector<16x64xf32> to vector<16x32xf32>
    %7 = vector.extract_strided_slice %5 {offsets = [0, 32], sizes = [16, 32], strides = [1, 1]} : vector<16x64xf32> to vector<16x32xf32>
    %8 = arith.negf %7 : vector<16x32xf32>
    %9 = math.exp %8 : vector<16x32xf32>
    %cst_5 = arith.constant 1.000000e+00 : f32
    %10 = vector.broadcast %cst_5 : f32 to vector<16x32xf32>
    %11 = arith.addf %10, %9 : vector<16x32xf32>
    %12 = arith.divf %10, %11 : vector<16x32xf32>
    %13 = math.tanh %6 : vector<16x32xf32>
    %14 = arith.mulf %12, %13 : vector<16x32xf32>
    %15 = tpu.concatenate %14, %6 in 1 : vector<16x32xf32>, vector<16x32xf32> -> vector<16x64xf32>
    %c0_6 = arith.constant 0 : index
    %c0_7 = arith.constant 0 : index
    %16 = vector.load %arg4[%c0_6, %c0_7] : memref<16x64xf32, #tpu.memory_space<vmem>>, vector<16x64xf32>
    tpu.vector_store %arg4[%c0_6, %c0_7], %15 {strides = array<i32>} : memref<16x64xf32, #tpu.memory_space<vmem>>, vector<16x64xf32>,
    return
  }
  func.func @transform_0(%arg0: i32) -> (i32, i32) {
    %c0_i32 = arith.constant 0 : i32
    %c0_i32_0 = arith.constant 0 : i32
    return %arg0, %c0_i32 : i32, i32
  }
  func.func @transform_1(%arg0: i32) -> (i32, i32) {
    %c0_i32 = arith.constant 0 : i32
    %c0_i32_0 = arith.constant 0 : i32
    %c0_i32_1 = arith.constant 0 : i32
    return %c0_i32, %c0_i32_0 : i32, i32
  }
  func.func @transform_2(%arg0: i32) -> (i32, i32) {
    %c0_i32 = arith.constant 0 : i32
    %c0_i32_0 = arith.constant 0 : i32
    %c0_i32_1 = arith.constant 0 : i32
    return %c0_i32, %c0_i32_0 : i32, i32
  }
  func.func @transform_3(%arg0: i32) -> (i32, i32) {
    %c0_i32 = arith.constant 0 : i32
    %c0_i32_0 = arith.constant 0 : i32
    return %arg0, %c0_i32 : i32, i32
  }
}

</mosaic_0001>

<bundles_post_ra>
// kernel: tpu_custom_call.1
= control target key start
LH: loop header
LB: loop body
LE: loop exit
PB: predicated region body
PF: predicated region fallthrough
CT: control target
= control target key end

     0   :  { %8 = vsyncpa [#allocation3], 0  ;;  %s349_s0 = inlined_call_operand.hbm [shape: f32[16,16], index: 0, kind: input, shape index: {}]   ;;  %s350_s1 = inlined_call_operand.hbm [shape: f32[16,64], index: 1, kind: input, shape index: {}]   ;;  %s351_s2 = inlined_call_operand.vmem [shape: f32[1,64], index: 2, kind: input, shape index: {}]   ;;  %s352_s3 = inlined_call_operand.hbm [shape: f32[16,64], index: 3, kind: output, shape index: {}]  }
   0x1   :  { %9 = vsyncpa [#allocation6], 0 }
   0x2   :  { %10 = vsyncpa [#allocation4], 0  ;;  %s301_s12 = smov [#allocation2]  }
   0x3   :  { %s16_s13 = sshll.u32 %s301_s12, 4  ;;  %s17_s13 = int_to_ptr.vmem [resolvable:$true] %s16_s13 }
   0x4   :  { %s243_s14 = scalar_lea.vmem %s17_s13, 256  ;;  %p248_p1 = scmp.lt.s32.totalorder %s17_s13, %s17_s13 }
   0x5   :  { %p244_p0 = scmp.ne.s32.totalorder %s17_s13, %s243_s14  ;;  %p249_p2 = scmp.lt.s32.totalorder %s243_s14, %s243_s14 }
   0x7   :  { %p250_p3 = por %p249_p2, %p248_p1 }
   0x9   :  { %p251_p4 = pnand %p250_p3, %p244_p0 }
   0xb   :  { %254 = shalt.err (!%p251_p4)
}
   0xc   :  { %s302_s15 = smov 128   ;;  %s303_s16 = smov 8  }
   0xd   :  { %22 = dma.hbm_to_vmem [thread:$0]  %s349_s0, 256, %s17_s13, [#allocation3], %s302_s15, %s302_s15, %s303_s16  }
   0xe   :  { %s304_s19 = smov [#allocation5]  }
   0xf   :  { %s28_s20 = sshll.u32 %s304_s19, 4  ;;  %s29_s20 = int_to_ptr.vmem [resolvable:$true] %s28_s20 }
  0x10   :  { %s263_s21 = scalar_lea.vmem %s29_s20, 256  ;;  %p268_p6 = scmp.lt.s32.totalorder %s29_s20, %s29_s20 }
  0x11   :  { %p264_p5 = scmp.ne.s32.totalorder %s29_s20, %s263_s21  ;;  %p269_p7 = scmp.lt.s32.totalorder %s263_s21, %s263_s21 }
  0x13   :  { %p270_p8 = por %p269_p7, %p268_p6 }
  0x15   :  { %p271_p9 = pnand %p270_p8, %p264_p5 }
  0x17   :  { %274 = shalt.err (!%p271_p9)
}
  0x18   :  { %34 = dma.hbm_to_vmem [thread:$0]  %s350_s1, 256, %s29_s20, [#allocation6], %s302_s15, %s302_s15, %s303_s16  }
  0x19   :  { %295 = dma.done.wait [#allocation3], 256  }
  0x1a   :  { %296 = vsyncadd [#allocation3], 4294967040 }
  0x1b   :  { %297 = dma.done.wait [#allocation6], 256  }
  0x1c   :  { %298 = vsyncadd [#allocation6], 4294967040  ;;  %vm54_vm0 = vcmask 130048   ;;  %v46_v0 = vld [vmem:[#allocation5 + $0x8] sm:$0xff]  ;;  %v45_v1 = vld [vmem:[#allocation5] sm:$0xff]  ;;  %s305_s1 = smov 32  }
  0x1d   :  { %v43_v2 = vld [vmem:[#allocation2] sm:$0xff]  ;;  %209 = vmatprep.subr.mxu0 %v46_v0  ;;  %v44_v3 = vld [vmem:[#allocation2 + $0x8] sm:$0xff]  ;;  %vm176_vm1 = vcmask 261120   ;;  %vm179_vm2 = vcmask 523264   ;;  %s307_s25 = smov [#allocation7]  }
  0x1e   :  { %213 = vmatprep.mubr.msk.f32.mxu0 %vm54_vm0, %v43_v2  ;;  %210 = vmatpush3.msra.mxu0 %v46_v0  ;;  %v200_v5 = vld [vmem:[%s351_s2] ss:$0 sm:$0xff]  ;;  %s306_s2 = smov 96   ;;  %s187_s26 = sshll.u32 %s307_s25, 4  ;;  %s188_s26 = int_to_ptr.vmem [resolvable:$true] %s187_s26 }
  0x1f   :  { %211 = vmatprep.subr.mxu0 %v45_v1  ;;  %s275_s27 = scalar_lea.vmem %s188_s26, 256  ;;  %p280_p11 = scmp.lt.s32.totalorder %s188_s26, %s188_s26 }
  0x20   :  { %212 = vmatpush3.msra.mxu0 %v45_v1  ;;  %p276_p10 = scmp.ne.s32.totalorder %s188_s26, %s275_s27  ;;  %p281_p12 = scmp.lt.s32.totalorder %s275_s27, %s275_s27 }
  0x21   :  { %214 = vmatmul.mubr.msk.f32.vlgmr.msra.gmra.mxu0 %vm54_vm0, %v44_v3 }
  0x22   :  { %p282_p13 = por %p281_p12, %p280_p11 }
  0x24   :  { %p283_p0 = pnand %p282_p13, %p276_p10 }
  0xe1   :  { %v215_v4 = vpop.f32.mrf.mxu0 }
  0xe2   :  { %v133_v8 = vadd.f32 %v215_v4, %v200_v5 }
  0xe3   :  { %v127_v6 = vpop.f32.mrf.mxu0 }
  0xe4   :  { %v128_v7 = vadd.f32 %v200_v5, %v127_v6  ;;  %v204_v11 = vmul.f32 -1.442695, %v133_v8 }
  0xe6   :  { %223 = vtanh.f32 %v128_v7  ;;  %v203_v12 = vmul.f32 -1.442695, %v128_v7 }
  0xe7   :  { %225 = vtanh.f32 %v133_v8 }
  0xe8   :  { %227 = vpow2.f32 %v204_v11 }
  0xe9   :  { %229 = vpow2.f32 %v203_v12 }
  0xf3   :  { %v224_v9 = vpop.eup %223 }
  0xf4   :  { %152 = vrot.lane.b32.xlu0 %v224_v9, %s305_s1  ;;  %v226_v10 = vpop.eup %225 }
  0xf5   :  { %v228_v13 = vpop.eup %227 }
  0xf6   :  { %v143_v14 = vadd.f32 1.0, %v228_v13  ;;  %v230_v15 = vpop.eup %229 }
  0xf7   :  { %v142_v16 = vadd.f32 1.0, %v230_v15 }
  0xf8   :  { %154 = vrot.lane.b32.xlu0 %v226_v10, %s305_s1  ;;  %231 = vrcp.f32 %v143_v14 }
  0xf9   :  { %233 = vrcp.f32 %v142_v16 }
  0xfc   :  { %170 = vrot.lane.b32.xlu0 %v128_v7, %s305_s1 }
 0x105   :  { %v232_v18 = vpop.eup %231 }
 0x106   :  { %v234_v21 = vpop.eup %233 }
 0x166   :  { %v153_v17 = vpop.permute.xlu0 %152 }
 0x167   :  { %v158_v22 = vmul.f32 %v234_v21, %v153_v17 }
 0x16a   :  { %v155_v19 = vpop.permute.xlu0 %154 }
 0x16b   :  { %v159_v20 = vmul.f32 %v232_v18, %v155_v19 }
 0x16d   :  { %164 = vrot.lane.b32.xlu1 %v159_v20, %s306_s2 }
 0x16e   :  { %v171_v24 = vpop.permute.xlu0 %170 }
 0x171   :  { %162 = vrot.lane.b32.xlu1 %v158_v22, %s306_s2 }
 0x175   :  { %172 = vrot.lane.b32.xlu1 %v133_v8, %s305_s1 }
 0x1df   :  { %v165_v23 = vpop.permute.xlu1 %164 }
 0x1e3   :  { %v163_v25 = vpop.permute.xlu1 %162 }
 0x1e4   :  { %v177_v26 = vsel %vm176_vm1, %v163_v25, %v171_v24 }
 0x1e5   :  { %180 = vst.msk [vmem:[#allocation7] sm:$0xff] %vm179_vm2, %v177_v26 }
 0x1e7   :  { %v173_v27 = vpop.permute.xlu1 %172 }
 0x1e8   :  { %v178_v28 = vsel %vm176_vm1, %v165_v23, %v173_v27 }
 0x1e9   :  { %181 = vst.msk [vmem:[#allocation7 + $0x8] sm:$0xff] %vm179_vm2, %v178_v28 }
 0x1ea   :  { %286 = shalt.err (!%p283_p0)
}
 0x1eb   :  { %193 = dma.vmem_to_hbm [thread:$0]  %s188_s26, 256, %s352_s3, [#allocation4], %s302_s15, %s302_s15, %s303_s16  }
 0x1ec   :  { %299 = dma.done.wait [#allocation4], 256  }
 0x1ed   :  { %300 = vsyncadd [#allocation4], 4294967040 }
 0x1ee   :  { %197 = vsyncpa [#allocation3], 1 }
 0x1ef   :  { %198 = vsyncpa [#allocation6], 1 }
 0x1f0   :  { %199 = vsyncpa [#allocation4], 1 }

</bundles_post_ra>
